<compile_context>
chip_gen: v7x
topology: tpu7x:2x2x1
jax: 0.10.0
libtpu: 0.0.40
codegen_flags: <defaults>
</compile_context>

<pallas_src>
import functools

import jax
import jax.numpy as jnp
from jax import lax
from jax.experimental import pallas as pl
from jax.experimental.pallas import tpu as pltpu


def _kl_div_batchmean_kernel(out_ref, lab_ref, part_ref, *, valid_rows, tile_rows):
    i = pl.program_id(0)

    # outputs.float() — upcast inside the kernel (VPU filler under the next DMA).
    x = out_ref[...].astype(jnp.float32)
    t = lab_ref[...].astype(jnp.float32)

    # numerically stable log_softmax along the class (lane) axis
    m = jnp.max(x, axis=1, keepdims=True)
    shifted = x - m
    lse = jnp.log(jnp.sum(jnp.exp(shifted), axis=1, keepdims=True))
    log_p = shifted - lse

    # KLDivLoss pointwise: xlogy(t, t) - t * log_p   (0*log(0) := 0, PyTorch convention)
    t_log_t = jnp.where(t > 0.0, t * jnp.log(jnp.where(t > 0.0, t, 1.0)), 0.0)
    pointwise = t_log_t - t * log_p

    # Mask out-of-range rows of the (possibly partial) last block. jnp.where is a
    # select, so NaN/Inf from garbage rows cannot leak into the sum; log_softmax is
    # per-row, so garbage rows never contaminate valid ones.
    row = i * tile_rows + lax.broadcasted_iota(jnp.int32, (tile_rows, 1), 0)
    pointwise = jnp.where(row < valid_rows, pointwise, 0.0)

    # Per-block partial: reduce over rows only; keep the class axis lane-dense.
    part_ref[...] = jnp.sum(pointwise, axis=0).reshape(1, 1, -1)


def _round_up(x, m):
    return ((x + m - 1) // m) * m


def cross_entropy(outputs, labels, *, block_rows=None):
    """Equivalent of CrossEntropy.forward(outputs, labels) from train.py."""
    assert outputs.shape == labels.shape and outputs.ndim == 2
    n, c = outputs.shape
    o_item = outputs.dtype.itemsize
    l_item = labels.dtype.itemsize

    # Sublane packing alignment: 8 rows for 4-byte, 16 for 2-byte, 32 for 1-byte.
    align = max(8, 32 // min(o_item, l_item))

    # Row tile: 2 inputs x 2 pipeline buffers within ~20 MiB of VMEM, aligned rows,
    # capped so the block never exceeds the (alignment-rounded) batch.
    budget = 20 * 1024 * 1024
    per_row_bytes = c * (o_item + l_item)
    if block_rows is None:
        tn = budget // (2 * per_row_bytes)
        tn = min(1024, tn)
    else:
        tn = int(block_rows)
        assert tn % align == 0, f"block_rows must be a multiple of {align}"
    tn = min(tn, _round_up(n, align))
    tn = max(align, (tn // align) * align)

    num_blocks = pl.cdiv(n, tn)
    tile_in_bytes = tn * per_row_bytes

    # Deeper input buffering only helps when the grid is long and tiles are tiny
    # (vocab-scale C): DMA issue latency would otherwise be exposed.
    use_triple = (block_rows is None and tn <= 32 and num_blocks >= 8
                  and 3 * tile_in_bytes <= 30 * 1024 * 1024)
    if use_triple:
        in_specs = [
            pl.BlockSpec((tn, c), lambda i: (i, 0), pipeline_mode=pl.Buffered(3)),
            pl.BlockSpec((tn, c), lambda i: (i, 0), pipeline_mode=pl.Buffered(3)),
        ]
        buf_count = 3
    else:
        in_specs = [
            pl.BlockSpec((tn, c), lambda i: (i, 0)),
            pl.BlockSpec((tn, c), lambda i: (i, 0)),
        ]
        buf_count = 2

    # Explicit VMEM limit: actual double/triple-buffered footprint + headroom,
    # conservative across v5e (16 MiB scoped default) / v6e / v7x (64 MiB physical).
    vmem_limit = int(min(48 << 20,
                         max(16 << 20,
                             buf_count * tile_in_bytes + 2 * c * 4 + (4 << 20))))

    kernel = functools.partial(_kl_div_batchmean_kernel, valid_rows=n, tile_rows=tn)

    cost = pl.CostEstimate(
        flops=7 * n * c,
        transcendentals=2 * n * c,
        bytes_accessed=n * c * (o_item + l_item) + num_blocks * c * 4,
    )

    partials = pl.pallas_call(
        kernel,
        out_shape=jax.ShapeDtypeStruct((num_blocks, 1, c), jnp.float32),
        grid=(num_blocks,),
        in_specs=in_specs,
        # per-block partial sums -> no shared accumulator -> batch axis is parallel
        out_specs=pl.BlockSpec((1, 1, c), lambda i: (i, 0, 0)),
        compiler_params=pltpu.CompilerParams(
            dimension_semantics=("parallel",),
            vmem_limit_bytes=vmem_limit,
        ),
        cost_estimate=cost,
    )(outputs, labels)

    # reduction='batchmean': total sum * (1/N); tiny final reduce stays in XLA.
    return jnp.sum(partials, dtype=jnp.float32) * jnp.float32(1.0 / n)


def _reference(outputs, labels):
    x = outputs.astype(jnp.float32)
    log_p = jax.nn.log_softmax(x, axis=1)
    t = labels.astype(jnp.float32)
    t_log_t = jnp.where(t > 0.0, t * jnp.log(jnp.where(t > 0.0, t, 1.0)), 0.0)
    return jnp.sum(t_log_t - t * log_p) / x.shape[0]


if __name__ == "__main__":
    key = jax.random.PRNGKey(0)
    k1, k2, k3, k4, k5, k6 = jax.random.split(key, 6)

    # Test 1: f32, batch divisible by the tile -> 4-step grid, per-block partials.
    N1, C1 = 64, 128
    outputs1 = jax.random.normal(k1, (N1, C1), dtype=jnp.float32)
    labels1 = jax.nn.softmax(jax.random.normal(k2, (N1, C1), dtype=jnp.float32), axis=1)
    loss1 = cross_entropy(outputs1, labels1, block_rows=16)
    jax.block_until_ready(loss1)
    ref1 = _reference(outputs1, labels1)
    assert jnp.allclose(loss1, ref1, rtol=1e-5, atol=1e-5), (loss1, ref1)

    # Test 2: bf16 inputs, ragged batch, multi-step grid -> last block masked in-kernel.
    N2, C2 = 50, 96
    outputs2 = jax.random.normal(k3, (N2, C2), dtype=jnp.float32).astype(jnp.bfloat16)
    labels2 = jax.nn.softmax(
        jax.random.normal(k4, (N2, C2), dtype=jnp.float32), axis=1
    ).astype(jnp.bfloat16)
    loss2 = cross_entropy(outputs2, labels2, block_rows=16)
    jax.block_until_ready(loss2)
    ref2 = _reference(outputs2, labels2)
    assert jnp.allclose(loss2, ref2, rtol=1e-5, atol=1e-5), (loss2, ref2)

    # Test 3: f32, ragged batch, auto tile (single block larger than the batch, masked).
    N3, C3 = 30, 40
    outputs3 = jax.random.normal(k5, (N3, C3), dtype=jnp.float32)
    labels3 = jax.nn.softmax(jax.random.normal(k6, (N3, C3), dtype=jnp.float32), axis=1)
    loss3 = cross_entropy(outputs3, labels3)
    jax.block_until_ready(loss3)
    ref3 = _reference(outputs3, labels3)
    assert jnp.allclose(loss3, ref3, rtol=1e-5, atol=1e-5), (loss3, ref3)

    print("KERNEL_OK")
</pallas_src>

<mosaic_0001>
module attributes {stable_mosaic.version = 11 : i64} {
  func.func @_kl_div_batchmean_kernel(%arg0: i32, %arg1: memref<16x128xf32, #tpu.memory_space<vmem>>, %arg2: memref<16x128xf32, #tpu.memory_space<vmem>>, %arg3: memref<1x1x128xf32, #tpu.memory_space<vmem>>) attributes {dimension_semantics = [#tpu.dimension_semantics<parallel>], iteration_bounds = array<i64: 4>, scalar_prefetch = 0 : i64, scratch_operands = 0 : i64, tpu.core_type = #tpu.core_type<tc>, window_params = [{transform_indices = @transform_0, window_bounds = array<i64: 16, 128>}, {transform_indices = @transform_1, window_bounds = array<i64: 16, 128>}, {transform_indices = @transform_2, window_bounds = array<i64: 1, 1, 128>}]} {
    %c0 = arith.constant 0 : index
    %c0_0 = arith.constant 0 : index
    %0 = vector.load %arg1[%c0, %c0_0] : memref<16x128xf32, #tpu.memory_space<vmem>>, vector<16x128xf32>
    %c0_1 = arith.constant 0 : index
    %c0_2 = arith.constant 0 : index
    %1 = vector.load %arg2[%c0_1, %c0_2] : memref<16x128xf32, #tpu.memory_space<vmem>>, vector<16x128xf32>
    %cst = arith.constant dense<0xFF800000> : vector<16xf32>
    %2 = vector.multi_reduction <maximumf>, %0, %cst [1] : vector<16x128xf32> to vector<16xf32>
    %3 = vector.shape_cast %2 : vector<16xf32> to vector<16x1xf32>
    %4 = vector.broadcast %3 : vector<16x1xf32> to vector<16x128xf32>
    %5 = arith.subf %0, %4 : vector<16x128xf32>
    %6 = math.exp %5 : vector<16x128xf32>
    %cst_3 = arith.constant dense<0.000000e+00> : vector<16xf32>
    %7 = vector.multi_reduction <add>, %6, %cst_3 [1] : vector<16x128xf32> to vector<16xf32>
    %8 = vector.shape_cast %7 : vector<16xf32> to vector<16x1xf32>
    %9 = math.log %8 : vector<16x1xf32>
    %10 = vector.broadcast %9 : vector<16x1xf32> to vector<16x128xf32>
    %11 = arith.subf %5, %10 : vector<16x128xf32>
    %cst_4 = arith.constant 0.000000e+00 : f32
    %12 = vector.broadcast %cst_4 : f32 to vector<16x128xf32>
    %13 = arith.cmpf ogt, %1, %12 : vector<16x128xf32>
    %cst_5 = arith.constant 0.000000e+00 : f32
    %14 = vector.broadcast %cst_5 : f32 to vector<16x128xf32>
    %15 = arith.cmpf ogt, %1, %14 : vector<16x128xf32>
    %cst_6 = arith.constant 1.000000e+00 : f32
    %16 = vector.broadcast %cst_6 : f32 to vector<16x128xf32>
    %17 = arith.select %15, %1, %16 : vector<16x128xi1>, vector<16x128xf32>
    %18 = math.log %17 : vector<16x128xf32>
    %19 = arith.mulf %1, %18 : vector<16x128xf32>
    %cst_7 = arith.constant 0.000000e+00 : f32
    %20 = vector.broadcast %cst_7 : f32 to vector<16x128xf32>
    %21 = arith.select %13, %19, %20 : vector<16x128xi1>, vector<16x128xf32>
    %22 = arith.mulf %1, %11 : vector<16x128xf32>
    %23 = arith.subf %21, %22 : vector<16x128xf32>
    %c16_i32 = arith.constant 16 : i32
    %24 = arith.muli %arg0, %c16_i32 : i32
    %25 = tpu.iota {dimensions = array<i32: 0>} : vector<16x1xi32>
    %26 = vector.broadcast %24 : i32 to vector<16x1xi32>
    %27 = arith.addi %26, %25 : vector<16x1xi32>
    %c64_i32 = arith.constant 64 : i32
    %28 = vector.broadcast %c64_i32 : i32 to vector<16x1xi32>
    %29 = arith.cmpi slt, %27, %28 : vector<16x1xi32>
    %cst_8 = arith.constant 0.000000e+00 : f32
    %30 = vector.shape_cast %29 : vector<16x1xi1> to vector<16x1xi1>
    %31 = vector.broadcast %30 : vector<16x1xi1> to vector<16x128xi1>
    %32 = vector.broadcast %cst_8 : f32 to vector<16x128xf32>
    %33 = arith.select %31, %23, %32 : vector<16x128xi1>, vector<16x128xf32>
    %cst_9 = arith.constant dense<0.000000e+00> : vector<128xf32>
    %34 = vector.multi_reduction <add>, %33, %cst_9 [0] : vector<16x128xf32> to vector<128xf32>
    %35 = vector.shape_cast %34 : vector<128xf32> to vector<1x1x128xf32>
    %c0_10 = arith.constant 0 : index
    %c0_11 = arith.constant 0 : index
    %c0_12 = arith.constant 0 : index
    %36 = vector.load %arg3[%c0_10, %c0_11, %c0_12] : memref<1x1x128xf32, #tpu.memory_space<vmem>>, vector<1x1x128xf32>
    tpu.vector_store %arg3[%c0_10, %c0_11, %c0_12], %35 {strides = array<i32>} : memref<1x1x128xf32, #tpu.memory_space<vmem>>, vector<1x1x128xf32>,
    return
  }
  func.func @transform_0(%arg0: i32) -> (i32, i32) {
    %c0_i32 = arith.constant 0 : i32
    %c0_i32_0 = arith.constant 0 : i32
    return %arg0, %c0_i32 : i32, i32
  }
  func.func @transform_1(%arg0: i32) -> (i32, i32) {
    %c0_i32 = arith.constant 0 : i32
    %c0_i32_0 = arith.constant 0 : i32
    return %arg0, %c0_i32 : i32, i32
  }
  func.func @transform_2(%arg0: i32) -> (i32, i32, i32) {
    %c0_i32 = arith.constant 0 : i32
    %c0_i32_0 = arith.constant 0 : i32
    %c0_i32_1 = arith.constant 0 : i32
    return %arg0, %c0_i32, %c0_i32_0 : i32, i32, i32
  }
}

</mosaic_0001>

<bundles_post_ra>
// kernel: tpu_custom_call.1
= control target key start
LH: loop header
LB: loop body
LE: loop exit
PB: predicated region body
PF: predicated region fallthrough
CT: control target
= control target key end

     0   :  { %7 = vsyncpa [#allocation3], 0  ;;  %s831_s0 = inlined_call_operand.hbm [shape: f32[64,128], index: 0, kind: input, shape index: {}]   ;;  %s832_s1 = inlined_call_operand.hbm [shape: f32[64,128], index: 1, kind: input, shape index: {}]   ;;  %s833_s2 = inlined_call_operand.hbm [shape: f32[4,1,128], index: 2, kind: output, shape index: {}]  }
   0x1   :  { %9 = vsyncpa [#allocation3 + $0x1], 0 }
   0x2   :  { %10 = vsyncpa [#allocation6], 0 }
   0x3   :  { %12 = vsyncpa [#allocation6 + $0x1], 0 }
   0x4   :  { %13 = vsyncpa [#allocation4], 0 }
   0x5   :  { %15 = vsyncpa [#allocation4 + $0x1], 0  ;;  %s603_s9 = smov 0   ;;  %s605_s10 = smov 0  }
   0x6   :  { %s607_s11 = smov 0   ;;  %s609_s12 = smov 0  }
   0x7 LB: > { %s624_s13 = sadd.s32 4294967295, %s581_s12   ;;  %s368_s14 = sadd.s32 4294967294, %s581_s12   ;;  %s581_s12 = sphi %s609_s12, %s848_s12   ;;  %s577_s11 = sphi %s607_s11, %s847_s11   ;;  %s573_s10 = sphi %s605_s10, %s846_s10   ;;  %s569_s9 = sphi %s603_s9, %s845_s9  }
   0x8   : > { %s628_s15 = sadd.s32 1, %s581_s12   ;;  %s28_s16 = sadd.s32 1, %s577_s11 }
   0x9   : > { %s25_s17 = ssub.s32 %s581_s12, %s628_s15  ;;  %p35_p0 = scmp.ne.s32.totalorder %s577_s11, %s573_s10 }
   0xa   : > { %p26_p1 = scmp.eq.s32.totalorder %s25_s17, 0  ;;  %p36_p2 = scmp.eq.s32.totalorder %s581_s12, 0 }
   0xb   : > { %p41_p3 = scmp.ne.s32.totalorder %s573_s10, %s569_s9  ;;  %p42_p4 = scmp.eq.s32.totalorder %s624_s13, 0 }
   0xc   : > { %s640_s18 = scalar_select %p26_p1, %s577_s11, %s28_s16  }
   0xd   : > { %p642_p5 = por %p36_p2, %p35_p0  ;;  %p646_p6 = por %p42_p4, %p41_p3 }
   0xe   : > { %p91_p7 = scmp.eq.s32.totalorder %s624_s13, 3  ;;  %p97_p8 = scmp.eq.s32.totalorder %s368_s14, 3 }
   0xf   : > { %s837_s20 = scalar_select %p646_p6, 1, 0 }
  0x10   : > { %p403_p9 = scmp.lt.s32.totalorder %s581_s12, 4  ;;  %p652_p10 = por %p91_p7, %p35_p0 }
  0x11   : > { %p656_p11 = por %p97_p8, %p41_p3  ;;  %s661_s23 = sand.u32 1, %s577_s11  }
  0x12   : > { %s838_s21 = scalar_select %p652_p10, 1, 0 }
  0x13   : > { %s839_s22 = scalar_select %p656_p11, 1, 0 }
  0x14   : > { %s384_s24 = sshll.u32 %s581_s12, 8  ;;  %s371_s25 = sshll.u32 %s661_s23, 4 }
  0x15   : > { %s670_s28 = scalar_lea.hbm %s831_s0, %s384_s24  ;;  %s121_s29 = scalar_lea.vmem [#allocation2], %s371_s25 }
  0x16   : > { %s128_s30 = sshll.u32 %s121_s29, 4  ;;  %p676_p12 = pnand %p403_p9, %p642_p5  ;;  %s680_s30 = int_to_ptr.vmem [resolvable:$true] %s128_s30 }
  0x17   : > { %s118_s4 = scalar_lea.sflag [#allocation3], %s661_s23  ;;  %s451_s5 = scalar_lea.hbm %s670_s28, 256 }
  0x18   : > { %p452_p13 = scmp.ne.s32.totalorder %s670_s28, %s451_s5  ;;  %p453_p0 = pneg %p676_p12 }
  0x19   : > { %s456_s8 = scalar_lea.hbm %s831_s0, 1024  ;;  %p457_p3 = scmp.lt.u32.totalorder %s670_s28, %s831_s0 }
  0x1a   : > { %p454_p1 = pnand %p453_p0, %p452_p13  ;;  %p458_p4 = scmp.lt.u32.totalorder %s456_s8, %s451_s5 }
  0x1b   : > { %p460_p7 = scmp.lt.u32.totalorder %s451_s5, %s670_s28 }
  0x1c   : > { %p455_p2 = pneg %p454_p1  ;;  %p459_p5 = por %p458_p4, %p457_p3 }
  0x1e   : > { %p461_p8 = por %p460_p7, %p459_p5 }
  0x20   : > { %p462_p9 = pnand %p461_p8, %p455_p2 }
  0x22   : > { %465 = shalt.err (!%p462_p9)
}
  0x23   : > { %s466_s17 = scalar_lea.vmem %s680_s30, 256  ;;  %s583_s19 = smov [#allocation2]  }
  0x24   : > { %p467_p13 = scmp.ne.s32.totalorder %s680_s30, %s466_s17  ;;  %s471_s26 = sshll.u32 %s583_s19, 4  ;;  %s472_s26 = int_to_ptr.vmem [resolvable:$false] %s471_s26 }
  0x25   : > { %s473_s27 = scalar_lea.vmem %s472_s26, 512  ;;  %p474_p10 = scmp.lt.s32.totalorder %s680_s30, %s472_s26 }
  0x26   : > { %p469_p1 = pnand %p467_p13, %p453_p0  ;;  %p475_p3 = scmp.lt.s32.totalorder %s473_s27, %s466_s17 }
  0x28   : > { %p470_p11 = pneg %p469_p1  ;;  %p476_p4 = por %p475_p3, %p474_p10 }
  0x2a   : > { %p477_p5 = pnand %p476_p4, %p470_p11 }
  0x2c   : > { %480 = shalt.err (!%p477_p5)
}
  0x2d   : > { %s584_s29 = smov 128   ;;  %s585_s5 = smov 8  }
  0x2e   : > { %395 = dma.hbm_to_vmem [thread:$0]  (!%p676_p12), %s670_s28, 256, %s680_s30, %s118_s4, %s584_s29, %s584_s29, %s585_s5  }
  0x2f   : > { %p377_p10 = scmp.ge.s32.totalorder %s581_s12, 1  ;;  %p157_p11 = scmp.lt.s32.totalorder %s581_s12, 5 }
  0x30   : > { %s724_s14 = scalar_lea.hbm %s832_s1, %s384_s24  ;;  %s142_s16 = scalar_lea.vmem [#allocation5], %s371_s25 }
  0x31   : > { %p715_p2 = pnand %p377_p10, %p157_p11  ;;  %s149_s17 = sshll.u32 %s142_s16, 4  ;;  %s728_s17 = int_to_ptr.vmem [resolvable:$true] %s149_s17 }
  0x32   : > { %s139_s28 = scalar_lea.sflag [#allocation6], %s661_s23  ;;  %s481_s30 = scalar_lea.hbm %s724_s14, 256 }
  0x33   : > { %p482_p7 = scmp.ne.s32.totalorder %s724_s14, %s481_s30  ;;  %s486_s24 = scalar_lea.hbm %s832_s1, 1024 }
  0x34   : > { %p487_p13 = scmp.lt.u32.totalorder %s724_s14, %s832_s1  ;;  %p488_p1 = scmp.lt.u32.totalorder %s486_s24, %s481_s30 }
  0x35   : > { %p484_p8 = pnand %p482_p7, %p453_p0  ;;  %p490_p4 = scmp.lt.u32.totalorder %s481_s30, %s724_s14 }
  0x36   : > { %p489_p3 = por %p488_p1, %p487_p13 }
  0x37   : > { %p485_p9 = pneg %p484_p8 }
  0x38   : > { %p491_p5 = por %p490_p4, %p489_p3 }
  0x3a   : > { %p492_p10 = pnand %p491_p5, %p485_p9 }
  0x3c   : > { %495 = shalt.err (!%p492_p10)
}
  0x3d   : > { %s496_s25 = scalar_lea.vmem %s728_s17, 256  ;;  %s586_s7 = smov [#allocation5]  }
  0x3e   : > { %p497_p11 = scmp.ne.s32.totalorder %s728_s17, %s496_s25  ;;  %s501_s8 = sshll.u32 %s586_s7, 4  ;;  %s502_s8 = int_to_ptr.vmem [resolvable:$false] %s501_s8 }
  0x3f   : > { %s503_s16 = scalar_lea.vmem %s502_s8, 512  ;;  %p504_p6 = scmp.lt.s32.totalorder %s728_s17, %s502_s8 }
  0x40   : > { %p499_p7 = pnand %p497_p11, %p453_p0  ;;  %p505_p13 = scmp.lt.s32.totalorder %s503_s16, %s496_s25 }
  0x42   : > { %p500_p8 = pneg %p499_p7  ;;  %p506_p1 = por %p505_p13, %p504_p6 }
  0x44   : > { %p507_p3 = pnand %p506_p1, %p500_p8 }
  0x46   : > { %510 = shalt.err (!%p507_p3)
}
  0x47   : > { %398 = dma.hbm_to_vmem [thread:$0]  (!%p676_p12), %s724_s14, 256, %s728_s17, %s139_s28, %s584_s29, %s584_s29, %s585_s5  }
  0x48   : > { %161 = sbr.rel (%p715_p2) target bundleno = 434 (0x1b2), region = 28  ;;  %s762_s30 = sand.u32 (!%p715_p2), 1, %s573_s10  }
  0x49   : > { %s378_s4 = sshll.u32 (!%p715_p2), %s762_s30, 4  ;;  %s164_s19 = scalar_lea.sflag (!%p715_p2), [#allocation3], %s762_s30 }
  0x4a   : > { %s167_s3 = scalar_lea.vmem (!%p715_p2), [#allocation2], %s378_s4  ;;  %p842_p6 = scmp.ne.s32.totalorder (!%p715_p2), %s837_s20, 0 }
  0x4f   : > { %556 = dma.done.wait (%p842_p6), %s164_s19, 256  }
  0x50   : > { %558 = vsyncadd (%p842_p6), %s164_s19, 4294967040  ;;  %s173_s23 = scalar_lea.sflag [#allocation6], %s762_s30  ;;  %s176_s29 = scalar_lea.vmem [#allocation5], %s378_s4 }
  0x51   : > { %560 = dma.done.wait (%p842_p6), %s173_s23, 256  }
  0x52   : > { %562 = vsyncadd (%p842_p6), %s173_s23, 4294967040  ;;  %v203_v0 = vld [vmem:[%s167_s3] sm:$0xff]  ;;  %v204_v1 = vld [vmem:[%s167_s3 + $0x8] sm:$0xff]  ;;  %v244_v17 = vlaneseq  ;;  %s380_s20 = sshll.u32 %s624_s13, 4  ;;  %s200_s5 = scalar_lea.vmem [#allocation7], %s762_s30 }
  0x53   : > { %207 = vmax.xlane.f32.xlu0 %v203_v0  ;;  %v205_v10 = vld [vmem:[%s176_s29] sm:$0xff]  ;;  %v206_v11 = vld [vmem:[%s176_s29 + $0x8] sm:$0xff]  ;;  %v247_v27 = vstv %s380_s20  ;;  %s279_s6 = sshll.u32 %s200_s5, 4  ;;  %s788_s28 = scalar_lea.hbm %s833_s2, %s380_s20  ;;  %s790_s6 = int_to_ptr.vmem [resolvable:$true] %s279_s6 }
  0x54   : > { %vm227_vm0 = vcmp.gt.f32.partialorder %v205_v10, 0.0  ;;  %vm228_vm1 = vcmp.gt.f32.partialorder %v206_v11, 0.0  ;;  %v245_v22 = vshrl.u32 %v244_v17, 7  ;;  %s267_s24 = scalar_lea.sflag [#allocation4], %s762_s30  ;;  %s511_s26 = scalar_lea.vmem %s790_s6, 16 }
  0x55   : > { %v229_v12 = vsel %vm227_vm0, %v205_v10, 1.0  ;;  %v230_v13 = vsel %vm228_vm1, %v206_v11, 1.0  ;;  %p512_p12 = scmp.ne.s32.totalorder %s790_s6, %s511_s26  ;;  %p843_p0 = scmp.ne.s32.totalorder %s838_s21, 0 }
  0x56   : > { %v246_v25 = vadd.s32 8, %v245_v22  ;;  %v248_v33 = vadd.s32 %v247_v27, %v245_v22  ;;  %s587_s27 = smov [#allocation7]  }
  0x57   : > { %209 = vmax.xlane.f32.xlu0 %v204_v1  ;;  %p513_p2 = pnand %p512_p12, %p843_p0  ;;  %s515_s25 = sshll.u32 %s587_s27, 4  ;;  %s516_s25 = int_to_ptr.vmem [resolvable:$false] %s515_s25 }
  0x58   : > { %v249_v34 = vadd.s32 %v247_v27, %v246_v25  ;;  %vm250_vm2 = vcmp.lt.s32.totalorder %v248_v33, 64  ;;  %s517_s13 = scalar_lea.vmem %s516_s25, 32  ;;  %p518_p4 = scmp.lt.s32.totalorder %s790_s6, %s516_s25 }
  0x59   : > { %p514_p9 = pneg %p513_p2  ;;  %p519_p5 = scmp.lt.s32.totalorder %s517_s13, %s511_s26 }
  0x5a   : > { %vm251_vm3 = vcmp.lt.s32.totalorder %v249_v34, 64 }
  0x5b   : > { %p520_p10 = por %p519_p5, %p518_p4 }
  0x5d   : > { %p521_p11 = pnand %p520_p10, %p514_p9 }
  0xe0   : > { %v208_v2 = vpop.xlane.xlu0 %207 }
  0xe1   : > { %v211_v3 = vsub.f32 %v203_v0, %v208_v2 }
  0xe3   : > { %v213_v4 = vmul.f32 1.442695, %v211_v3 }
  0xe4   : > { %v210_v5 = vpop.xlane.xlu0 %209 }
  0xe5   : > { %v212_v6 = vsub.f32 %v204_v1, %v210_v5  ;;  %439 = vpow2.f32 %v213_v4 }
  0xe7   : > { %v215_v7 = vmul.f32 1.442695, %v212_v6 }
  0xe9   : > { %441 = vpow2.f32 %v215_v7 }
  0xea   : > { %443 = vlog2.f32 %v229_v12 }
  0xeb   : > { %445 = vlog2.f32 %v230_v13 }
  0xef   : > { %v440_v8 = vpop.eup %439 }
  0xf0   : > { %217 = vadd.xlane.f32.xlu1 %v440_v8 }
  0xf3   : > { %v442_v9 = vpop.eup %441 }
  0xf4   : > { %219 = vadd.xlane.f32.xlu1 %v442_v9  ;;  %v444_v16 = vpop.eup %443 }
  0xf5   : > { %v446_v18 = vpop.eup %445  ;;  %v232_v19 = vmul.f32 0.6931472, %v444_v16 }
  0xf6   : > { %v234_v21 = vmul.f32 0.6931472, %v446_v18 }
  0xf7   : > { %v235_v24 = vmul.f32 %v232_v19, %v205_v10 }
  0xf8   : > { %v236_v29 = vmul.f32 %v234_v21, %v206_v11 }
  0xf9   : > { %v237_v32 = vsel %vm227_vm0, %v235_v24, 0.0 }
  0xfa   : > { %v238_v36 = vsel %vm228_vm1, %v236_v29, 0.0 }
 0x17d   : > { %v218_v14 = vpop.xlane.xlu1 %217 }
 0x17e   : > { %447 = vlog2.f32 %v218_v14 }
 0x181   : > { %v220_v15 = vpop.xlane.xlu1 %219 }
 0x182   : > { %449 = vlog2.f32 %v220_v15 }
 0x188   : > { %v448_v20 = vpop.eup %447 }
 0x189   : > { %v222_v23 = vmul.f32 0.6931472, %v448_v20 }
 0x18b   : > { %v225_v26 = vsub.f32 %v211_v3, %v222_v23 }
 0x18c   : > { %v450_v28 = vpop.eup %449 }
 0x18d   : > { %v239_v30 = vmul.f32 %v225_v26, %v205_v10  ;;  %v224_v31 = vmul.f32 0.6931472, %v450_v28 }
 0x18f   : > { %v226_v35 = vsub.f32 %v212_v6, %v224_v31  ;;  %v241_v37 = vsub.f32 %v237_v32, %v239_v30 }
 0x191   : > { %v240_v38 = vmul.f32 %v226_v35, %v206_v11  ;;  %v256_v40 = vsel %vm250_vm2, %v241_v37, 0.0 }
 0x193   : > { %v242_v39 = vsub.f32 %v238_v36, %v240_v38 }
 0x195   : > { %v257_v41 = vsel %vm251_vm3, %v242_v39, 0.0 }
 0x196   : > { %v258_v42 = vadd.f32 %v257_v41, %v256_v40 }
 0x198   : > { %v259_v43 = vrot.slane %v258_v42, 4 }
 0x19a   : > { %v260_v44 = vadd.f32 %v259_v43, %v258_v42 }
 0x19c   : > { %v261_v45 = vrot.slane %v260_v44, 2 }
 0x19e   : > { %v262_v46 = vadd.f32 %v261_v45, %v260_v44 }
 0x1a0   : > { %v263_v47 = vrot.slane %v262_v46, 1 }
 0x1a2   : > { %v264_v48 = vadd.f32 %v263_v47, %v262_v46 }
 0x1a4   : > { %265 = vst [vmem:[%s200_s5] sm:$0x1] %v264_v48 }
 0x1a5   : > { %524 = shalt.err (!%p521_p11)
}
 0x1a6   : > { %s525_s7 = scalar_lea.hbm %s788_s28, 16  ;;  %s529_s30 = scalar_lea.hbm %s833_s2, 64 }
 0x1a7   : > { %p526_p7 = scmp.ne.s32.totalorder %s788_s28, %s525_s7  ;;  %p530_p1 = scmp.lt.u32.totalorder %s788_s28, %s833_s2 }
 0x1a8   : > { %p531_p3 = scmp.lt.u32.totalorder %s529_s30, %s525_s7  ;;  %p533_p12 = scmp.lt.u32.totalorder %s525_s7, %s788_s28 }
 0x1a9   : > { %p527_p8 = pnand %p526_p7, %p843_p0 }
 0x1aa   : > { %p532_p6 = por %p531_p3, %p530_p1 }
 0x1ab   : > { %p528_p13 = pneg %p527_p8 }
 0x1ac   : > { %p534_p2 = por %p533_p12, %p532_p6 }
 0x1ae   : > { %p535_p9 = pnand %p534_p2, %p528_p13 }
 0x1b0   : > { %538 = shalt.err (!%p535_p9)
}
 0x1b1   : > { %390 = dma.vmem_to_hbm [thread:$0]  (%p843_p0), %s790_s6, 16, %s788_s28, %s267_s24  }
 0x1b2 PF: > { %p404_p4 = scmp.ge.s32.totalorder %s581_s12, 2  ;;  %s291_s3 = sand.u32 1, %s569_s9  }
 0x1b3   : > { %p844_p5 = scmp.ne.s32.totalorder %s839_s22, 0  ;;  %s292_s23 = scalar_lea.sflag [#allocation4], %s291_s3 }
 0x1b5   : > { %p400_p10 = pnand %p404_p4, %p844_p5 }
 0x1b7   : > { %564 = dma.done.wait (!%p400_p10), %s292_s23, 16  }
 0x1b8   : > { %566 = vsyncadd (!%p400_p10), %s292_s23, 4294967280  ;;  %p18_p11 = scmp.ge.s32.totalorder %s628_s15, 6   ;;  %s845_s9 = smov %s573_s10 }
 0x1b9   : > { %s846_s10 = smov %s577_s11  ;;  %s847_s11 = smov %s640_s18 }
 0x1ba   : > { %s848_s12 = smov %s628_s15  ;;  %20 = sbr.rel (!%p18_p11) target bundleno = 7 (0x7), region = 86 }
 0x1c1   :  { %296 = vsyncpa [#allocation3], 1 }
 0x1c2   :  { %298 = vsyncpa [#allocation3 + $0x1], 1 }
 0x1c3   :  { %299 = vsyncpa [#allocation6], 1 }
 0x1c4   :  { %301 = vsyncpa [#allocation6 + $0x1], 1 }
 0x1c5   :  { %302 = vsyncpa [#allocation4], 1 }
 0x1c6   :  { %304 = vsyncpa [#allocation4 + $0x1], 1 }

</bundles_post_ra>
